<compile_context>
chip_gen: v7x
topology: tpu7x:2x2x1
jax: 0.10.0
libtpu: 0.0.40
codegen_flags: <defaults>
</compile_context>

<pallas_src>
import functools
import math

import jax
import jax.numpy as jnp
from jax.experimental import pallas as pl
from jax.experimental.pallas import tpu as pltpu


_LANE = 128                        # every layer OUTPUT dim padded to this
_GRID_STEP_OVERHEAD_ROWS = 64      # ~0.35 us per grid step, expressed in "rows"


def _round_up(n, m):
    return ((n + m - 1) // m) * m


def _sublane(dtype):
    # rows per packed vreg sublane group: 8 for 4-byte, 16 for 2-byte, 32 for 1-byte
    return max(8, 32 // jnp.dtype(dtype).itemsize)


def _detect_vmem_budget():
    cap = None
    try:
        info = pltpu.get_tpu_info()
        cap = getattr(info, "vmem_capacity_bytes", None)
    except Exception:
        cap = None
    if not cap:
        cap = 64 * 1024 * 1024          # conservative default = v7x per-core VMEM
    return min(int(cap * 0.75), 112 * 1024 * 1024)


# --------------------------------------------------------------------------
# Kernels
# --------------------------------------------------------------------------
def _fused_mlp_kernel(x_ref, *refs, num_layers, compute_dtype):
    """Whole layer stack over one batch tile; intermediates never leave VMEM.

    refs = (w_0, b_0, ..., w_{L-1}, b_{L-1}, o_ref).  Weights are [in, out]
    (transposed vs. torch Linear.weight), stored in compute_dtype, zero-padded;
    padding contributes exactly zero to every dot product.
    """
    o_ref = refs[-1]
    h = x_ref[...]
    for i in range(num_layers):
        w = refs[2 * i][...]                      # already in compute_dtype
        b = refs[2 * i + 1][...]
        y = jnp.dot(h.astype(compute_dtype), w,
                    preferred_element_type=jnp.float32)   # MXU, f32 accumulate
        y = y + b.astype(jnp.float32)
        if i < num_layers - 1:
            y = jnp.where(y >= 0.0, y, 0.2 * y)   # LeakyReLU(negative_slope=0.2)
        h = y
    o_ref[...] = h.astype(o_ref.dtype)


def _layer_kernel(x_ref, w_ref, b_ref, o_ref, acc_ref, *, activate, compute_dtype):
    """(M, N, K)-tiled Linear (+ optional LeakyReLU) for non-resident weights."""
    k = pl.program_id(2)

    @pl.when(k == 0)
    def _():
        acc_ref[...] = jnp.zeros_like(acc_ref)

    acc_ref[...] += jnp.dot(x_ref[...].astype(compute_dtype), w_ref[...],
                            preferred_element_type=jnp.float32)

    @pl.when(k == pl.num_programs(2) - 1)
    def _():
        y = acc_ref[...] + b_ref[...].astype(jnp.float32)
        if activate:
            y = jnp.where(y >= 0.0, y, 0.2 * y)
        o_ref[...] = y.astype(o_ref.dtype)


# --------------------------------------------------------------------------
# Module
# --------------------------------------------------------------------------
class MLP:
    """JAX/Pallas port of the PyTorch MLP(*sizes, dropout=False) module."""

    def __init__(self, *sizes, dropout=False, key=None, dtype=jnp.float32,
                 compute_dtype=None):
        assert len(sizes) >= 2
        self.sizes = tuple(int(s) for s in sizes)
        self.dropout = dropout              # inference identity (module default)
        self.dtype = dtype
        self.compute_dtype = compute_dtype if compute_dtype is not None else dtype
        self._b_align = _sublane(self.dtype)                         # batch tile align
        self._k_align = max(_sublane(self.dtype), _sublane(self.compute_dtype))
        self._vmem_budget = _detect_vmem_budget()

        # Layer-0 contraction dim padded only to sublane multiple; all layer
        # OUTPUT dims padded to 128 lanes (unmasked vst + MXU N alignment).
        self.padded = (_round_up(self.sizes[0], self._k_align),) + tuple(
            _round_up(s, _LANE) for s in self.sizes[1:])

        if key is None:
            key = jax.random.PRNGKey(0)
        self.params = []         # unpadded (pure-JAX reference)
        self.padded_params = []  # zero-padded, stored in compute_dtype (kernel)
        for i in range(1, len(self.sizes)):
            fan_in, fan_out = self.sizes[i - 1], self.sizes[i]
            key, wk, bk = jax.random.split(key, 3)
            bound = 1.0 / math.sqrt(fan_in)     # PyTorch nn.Linear init
            w = jax.random.uniform(wk, (fan_in, fan_out), dtype, -bound, bound)
            b = jax.random.uniform(bk, (1, fan_out), dtype, -bound, bound)
            self.params.append((w, b))

            in_p, out_p = self.padded[i - 1], self.padded[i]
            wp = jnp.zeros((in_p, out_p), self.compute_dtype
                           ).at[:fan_in, :fan_out].set(w.astype(self.compute_dtype))
            bp = jnp.zeros((1, out_p), self.compute_dtype
                           ).at[:, :fan_out].set(b.astype(self.compute_dtype))
            self.padded_params.append((wp, bp))

    # ---- tiling ----------------------------------------------------------
    def _weight_bytes(self):
        return sum(w.size * w.dtype.itemsize + b.size * b.dtype.itemsize
                   for w, b in self.padded_params)

    def _footprint(self, tile_b):
        itemsize = jnp.dtype(self.dtype).itemsize
        in_p, out_p, max_hid = self.padded[0], self.padded[-1], max(self.padded)
        return (self._weight_bytes()                # single copy (pl.Buffered(1))
                + 2 * tile_b * in_p * itemsize      # double-buffered x stream
                + 2 * tile_b * out_p * itemsize     # double-buffered out stream
                + 2 * tile_b * max_hid * 4)         # f32 intermediates (live pair)

    def _pick_tile_b(self, batch):
        """Batch tile minimizing padded work + grid-step overhead.
        Returns None if the weight stack cannot be VMEM-resident at any tile."""
        align = self._b_align
        candidates = [t for t in (2048, 1024, 512, 256, 128, 64, 32, 16, 8)
                      if t % align == 0]
        best, best_cost = None, None
        for t in candidates:                        # descending -> ties keep larger
            if self._footprint(t) > self._vmem_budget:
                continue
            batch_p = _round_up(batch, t)
            cost = batch_p + _GRID_STEP_OVERHEAD_ROWS * (batch_p // t)
            if best_cost is None or cost < best_cost:
                best, best_cost = t, cost
        return best

    # ---- forward ---------------------------------------------------------
    def __call__(self, x):
        batch, in_f = x.shape
        assert in_f == self.sizes[0]
        out_f = self.sizes[-1]

        tile_b = self._pick_tile_b(batch)
        if tile_b is None:
            # Weights too large to stay VMEM-resident -> per-layer tiled kernels.
            return self._layerwise_forward(x)

        # v7x megacore: make sure the "parallel" batch axis has >= 2 tiles.
        while tile_b >= 2 * self._b_align and _round_up(batch, tile_b) // tile_b < 2:
            tile_b //= 2

        in_p = self.padded[0]
        batch_p = _round_up(batch, tile_b)
        xp = x
        if (batch_p, in_p) != (batch, in_f):
            xp = jnp.zeros((batch_p, in_p), x.dtype).at[:batch, :in_f].set(x)

        try:
            out = self._fused_call(xp, tile_b, single_buffer_weights=True)
        except Exception:
            # Older JAX builds may reject pipeline_mode on pallas_call BlockSpecs.
            out = self._fused_call(xp, tile_b, single_buffer_weights=False)
        return out[:batch, :out_f]

    def _fused_call(self, xp, tile_b, *, single_buffer_weights):
        batch_p, in_p = xp.shape
        out_p = self.padded[-1]
        num_layers = len(self.padded_params)

        w_kwargs = {"pipeline_mode": pl.Buffered(1)} if single_buffer_weights else {}
        flat_params = []
        in_specs = [pl.BlockSpec((tile_b, in_p), lambda i: (i, 0))]   # streamed
        for wp, bp in self.padded_params:
            flat_params += [wp, bp]
            # constant index_map -> VMEM-resident across batch tiles
            in_specs.append(pl.BlockSpec(wp.shape, lambda i: (0, 0), **w_kwargs))
            in_specs.append(pl.BlockSpec(bp.shape, lambda i: (0, 0), **w_kwargs))

        flops = sum(2 * batch_p * wp.shape[0] * wp.shape[1]
                    for wp, _ in self.padded_params)
        bytes_accessed = (xp.size * xp.dtype.itemsize + self._weight_bytes()
                          + batch_p * out_p * jnp.dtype(xp.dtype).itemsize)

        kernel = functools.partial(_fused_mlp_kernel, num_layers=num_layers,
                                   compute_dtype=self.compute_dtype)
        return pl.pallas_call(
            kernel,
            out_shape=jax.ShapeDtypeStruct((batch_p, out_p), xp.dtype),
            grid_spec=pltpu.PrefetchScalarGridSpec(
                num_scalar_prefetch=0,
                grid=(batch_p // tile_b,),
                in_specs=in_specs,
                out_specs=pl.BlockSpec((tile_b, out_p), lambda i: (i, 0)),
            ),
            compiler_params=pltpu.CompilerParams(
                dimension_semantics=("parallel",),     # megacore-shard batch (v7x)
                vmem_limit_bytes=self._vmem_budget,
            ),
            cost_estimate=pl.CostEstimate(flops=flops, transcendentals=0,
                                          bytes_accessed=bytes_accessed),
        )(xp, *flat_params)

    # ---- fallback: per-layer tiled matmul (weights not VMEM-resident) -----
    @staticmethod
    def _largest_divisor(dim, candidates):
        for c in candidates:
            if dim % c == 0:
                return c
        return dim

    def _layerwise_forward(self, x):
        batch, in_f = x.shape
        out_f = self.sizes[-1]
        tm = _round_up(min(256, _round_up(batch, self._b_align)), self._b_align)
        batch_p = _round_up(batch, tm)
        in_p = self.padded[0]
        h = x
        if (batch_p, in_p) != (batch, in_f):
            h = jnp.zeros((batch_p, in_p), x.dtype).at[:batch, :in_f].set(x)
        n = len(self.padded_params)
        for idx, (wp, bp) in enumerate(self.padded_params):
            h = self._layer_call(h, wp, bp, tm=tm, activate=(idx < n - 1))
        return h[:batch, :out_f]

    def _layer_call(self, h, wp, bp, *, tm, activate):
        mp, kdim = h.shape
        _, ndim = wp.shape
        tn = self._largest_divisor(ndim, (512, 256, 128))
        if kdim % _LANE != 0 or kdim <= 2048:
            tk = kdim                                   # full contraction dim
        else:
            tk = self._largest_divisor(kdim, (2048, 1024, 512, 256, 128))
        grid = (mp // tm, ndim // tn, kdim // tk)
        kernel = functools.partial(_layer_kernel, activate=activate,
                                   compute_dtype=self.compute_dtype)
        return pl.pallas_call(
            kernel,
            out_shape=jax.ShapeDtypeStruct((mp, ndim), h.dtype),
            grid_spec=pltpu.PrefetchScalarGridSpec(
                num_scalar_prefetch=0,
                grid=grid,
                in_specs=[pl.BlockSpec((tm, tk), lambda i, j, k: (i, k)),
                          pl.BlockSpec((tk, tn), lambda i, j, k: (k, j)),
                          pl.BlockSpec((1, tn), lambda i, j, k: (0, j))],
                out_specs=pl.BlockSpec((tm, tn), lambda i, j, k: (i, j)),
                scratch_shapes=[pltpu.VMEM((tm, tn), jnp.float32)],
            ),
            compiler_params=pltpu.CompilerParams(
                dimension_semantics=("parallel", "parallel", "arbitrary"),
                vmem_limit_bytes=self._vmem_budget,
            ),
        )(h, wp, bp)


def _reference_forward(mlp, x):
    # Pure-JAX reference (unpadded f32 parameters).
    n = len(mlp.params)
    for idx, (w, b) in enumerate(mlp.params):
        x = x @ w + b
        if idx < n - 1:
            x = jnp.where(x >= 0.0, x, 0.2 * x)
    return x


if __name__ == "__main__":
    key = jax.random.PRNGKey(0)
    key_x, key_p = jax.random.split(key)

    batch = 8
    sizes = (32, 64, 48, 16)        # MLP(32, 64, 48, 16)
    x = jax.random.normal(key_x, (batch, sizes[0]), dtype=jnp.float32)

    # 1) default f32 fused path — must match the reference tightly
    mlp = MLP(*sizes, dropout=False, key=key_p)
    out = jax.block_until_ready(mlp(x))
    ref = _reference_forward(mlp, x)
    assert out.shape == (batch, sizes[-1])
    assert jnp.allclose(out, ref, atol=1e-5, rtol=1e-5)

    # 2) per-layer tiled fallback path (exercised explicitly)
    out_lw = jax.block_until_ready(mlp._layerwise_forward(x))
    assert out_lw.shape == (batch, sizes[-1])
    assert jnp.allclose(out_lw, ref, atol=1e-5, rtol=1e-5)

    # 3) bf16-stored weights (halved HBM traffic / VMEM residency); looser tol
    mlp_bf16 = MLP(*sizes, dropout=False, key=key_p, compute_dtype=jnp.bfloat16)
    out_bf16 = jax.block_until_ready(mlp_bf16(x))
    ref_bf16 = _reference_forward(mlp_bf16, x)
    assert jnp.allclose(out_bf16, ref_bf16, atol=5e-2, rtol=5e-2)

    print("KERNEL_OK")
</pallas_src>

<mosaic_0001>
module attributes {stable_mosaic.version = 11 : i64} {
  func.func @_fused_mlp_kernel(%arg0: i32, %arg1: memref<8x32xf32, #tpu.memory_space<vmem>>, %arg2: memref<32x128xf32, #tpu.memory_space<vmem>>, %arg3: memref<1x128xf32, #tpu.memory_space<vmem>>, %arg4: memref<128x128xf32, #tpu.memory_space<vmem>>, %arg5: memref<1x128xf32, #tpu.memory_space<vmem>>, %arg6: memref<128x128xf32, #tpu.memory_space<vmem>>, %arg7: memref<1x128xf32, #tpu.memory_space<vmem>>, %arg8: memref<8x128xf32, #tpu.memory_space<vmem>>) attributes {dimension_semantics = [#tpu.dimension_semantics<parallel>], iteration_bounds = array<i64: 1>, scalar_prefetch = 0 : i64, scratch_operands = 0 : i64, tpu.core_type = #tpu.core_type<tc>, window_params = [{transform_indices = @transform_0, window_bounds = array<i64: 8, 32>}, {pipeline_mode = #tpu.pipeline_mode<synchronous>, transform_indices = @transform_1, window_bounds = array<i64: 32, 128>}, {pipeline_mode = #tpu.pipeline_mode<synchronous>, transform_indices = @transform_2, window_bounds = array<i64: 1, 128>}, {pipeline_mode = #tpu.pipeline_mode<synchronous>, transform_indices = @transform_3, window_bounds = array<i64: 128, 128>}, {pipeline_mode = #tpu.pipeline_mode<synchronous>, transform_indices = @transform_4, window_bounds = array<i64: 1, 128>}, {pipeline_mode = #tpu.pipeline_mode<synchronous>, transform_indices = @transform_5, window_bounds = array<i64: 128, 128>}, {pipeline_mode = #tpu.pipeline_mode<synchronous>, transform_indices = @transform_6, window_bounds = array<i64: 1, 128>}, {transform_indices = @transform_7, window_bounds = array<i64: 8, 128>}]} {
    %c0 = arith.constant 0 : index
    %c0_0 = arith.constant 0 : index
    %0 = vector.load %arg1[%c0, %c0_0] : memref<8x32xf32, #tpu.memory_space<vmem>>, vector<8x32xf32>
    %c0_1 = arith.constant 0 : index
    %c0_2 = arith.constant 0 : index
    %1 = vector.load %arg2[%c0_1, %c0_2] : memref<32x128xf32, #tpu.memory_space<vmem>>, vector<32x128xf32>
    %c0_3 = arith.constant 0 : index
    %c0_4 = arith.constant 0 : index
    %2 = vector.load %arg3[%c0_3, %c0_4] : memref<1x128xf32, #tpu.memory_space<vmem>>, vector<1x128xf32>
    %cst = arith.constant dense<0.000000e+00> : vector<8x128xf32>
    %3 = tpu.matmul %0, %1, %cst {dimension_numbers = #tpu.dot_dimension_numbers<[1], [0], [0], [1], [0, 0, 1, 1], [], []>} : vector<8x32xf32>, vector<32x128xf32>, vector<8x128xf32> -> vector<8x128xf32>
    %4 = vector.broadcast %2 : vector<1x128xf32> to vector<8x128xf32>
    %5 = arith.addf %3, %4 : vector<8x128xf32>
    %cst_5 = arith.constant 0.000000e+00 : f32
    %6 = vector.broadcast %cst_5 : f32 to vector<8x128xf32>
    %7 = arith.cmpf oge, %5, %6 : vector<8x128xf32>
    %cst_6 = arith.constant 2.000000e-01 : f32
    %8 = vector.broadcast %cst_6 : f32 to vector<8x128xf32>
    %9 = arith.mulf %8, %5 : vector<8x128xf32>
    %10 = arith.select %7, %5, %9 : vector<8x128xi1>, vector<8x128xf32>
    %c0_7 = arith.constant 0 : index
    %c0_8 = arith.constant 0 : index
    %11 = vector.load %arg4[%c0_7, %c0_8] : memref<128x128xf32, #tpu.memory_space<vmem>>, vector<128x128xf32>
    %c0_9 = arith.constant 0 : index
    %c0_10 = arith.constant 0 : index
    %12 = vector.load %arg5[%c0_9, %c0_10] : memref<1x128xf32, #tpu.memory_space<vmem>>, vector<1x128xf32>
    %cst_11 = arith.constant dense<0.000000e+00> : vector<8x128xf32>
    %13 = tpu.matmul %10, %11, %cst_11 {dimension_numbers = #tpu.dot_dimension_numbers<[1], [0], [0], [1], [0, 0, 1, 1], [], []>} : vector<8x128xf32>, vector<128x128xf32>, vector<8x128xf32> -> vector<8x128xf32>
    %14 = vector.broadcast %12 : vector<1x128xf32> to vector<8x128xf32>
    %15 = arith.addf %13, %14 : vector<8x128xf32>
    %cst_12 = arith.constant 0.000000e+00 : f32
    %16 = vector.broadcast %cst_12 : f32 to vector<8x128xf32>
    %17 = arith.cmpf oge, %15, %16 : vector<8x128xf32>
    %cst_13 = arith.constant 2.000000e-01 : f32
    %18 = vector.broadcast %cst_13 : f32 to vector<8x128xf32>
    %19 = arith.mulf %18, %15 : vector<8x128xf32>
    %20 = arith.select %17, %15, %19 : vector<8x128xi1>, vector<8x128xf32>
    %c0_14 = arith.constant 0 : index
    %c0_15 = arith.constant 0 : index
    %21 = vector.load %arg6[%c0_14, %c0_15] : memref<128x128xf32, #tpu.memory_space<vmem>>, vector<128x128xf32>
    %c0_16 = arith.constant 0 : index
    %c0_17 = arith.constant 0 : index
    %22 = vector.load %arg7[%c0_16, %c0_17] : memref<1x128xf32, #tpu.memory_space<vmem>>, vector<1x128xf32>
    %cst_18 = arith.constant dense<0.000000e+00> : vector<8x128xf32>
    %23 = tpu.matmul %20, %21, %cst_18 {dimension_numbers = #tpu.dot_dimension_numbers<[1], [0], [0], [1], [0, 0, 1, 1], [], []>} : vector<8x128xf32>, vector<128x128xf32>, vector<8x128xf32> -> vector<8x128xf32>
    %24 = vector.broadcast %22 : vector<1x128xf32> to vector<8x128xf32>
    %25 = arith.addf %23, %24 : vector<8x128xf32>
    %c0_19 = arith.constant 0 : index
    %c0_20 = arith.constant 0 : index
    %26 = vector.load %arg8[%c0_19, %c0_20] : memref<8x128xf32, #tpu.memory_space<vmem>>, vector<8x128xf32>
    tpu.vector_store %arg8[%c0_19, %c0_20], %25 {strides = array<i32>} : memref<8x128xf32, #tpu.memory_space<vmem>>, vector<8x128xf32>,
    return
  }
  func.func @transform_0(%arg0: i32) -> (i32, i32) {
    %c0_i32 = arith.constant 0 : i32
    %c0_i32_0 = arith.constant 0 : i32
    return %arg0, %c0_i32 : i32, i32
  }
  func.func @transform_1(%arg0: i32) -> (i32, i32) {
    %c0_i32 = arith.constant 0 : i32
    %c0_i32_0 = arith.constant 0 : i32
    %c0_i32_1 = arith.constant 0 : i32
    return %c0_i32, %c0_i32_0 : i32, i32
  }
  func.func @transform_2(%arg0: i32) -> (i32, i32) {
    %c0_i32 = arith.constant 0 : i32
    %c0_i32_0 = arith.constant 0 : i32
    %c0_i32_1 = arith.constant 0 : i32
    return %c0_i32, %c0_i32_0 : i32, i32
  }
  func.func @transform_3(%arg0: i32) -> (i32, i32) {
    %c0_i32 = arith.constant 0 : i32
    %c0_i32_0 = arith.constant 0 : i32
    %c0_i32_1 = arith.constant 0 : i32
    return %c0_i32, %c0_i32_0 : i32, i32
  }
  func.func @transform_4(%arg0: i32) -> (i32, i32) {
    %c0_i32 = arith.constant 0 : i32
    %c0_i32_0 = arith.constant 0 : i32
    %c0_i32_1 = arith.constant 0 : i32
    return %c0_i32, %c0_i32_0 : i32, i32
  }
  func.func @transform_5(%arg0: i32) -> (i32, i32) {
    %c0_i32 = arith.constant 0 : i32
    %c0_i32_0 = arith.constant 0 : i32
    %c0_i32_1 = arith.constant 0 : i32
    return %c0_i32, %c0_i32_0 : i32, i32
  }
  func.func @transform_6(%arg0: i32) -> (i32, i32) {
    %c0_i32 = arith.constant 0 : i32
    %c0_i32_0 = arith.constant 0 : i32
    %c0_i32_1 = arith.constant 0 : i32
    return %c0_i32, %c0_i32_0 : i32, i32
  }
  func.func @transform_7(%arg0: i32) -> (i32, i32) {
    %c0_i32 = arith.constant 0 : i32
    %c0_i32_0 = arith.constant 0 : i32
    return %arg0, %c0_i32 : i32, i32
  }
}

module attributes {stable_mosaic.version = 11 : i64} {
  func.func @_fused_mlp_kernel(%arg0: i32, %arg1: memref<8x32xf32, #tpu.memory_space<vmem>>, %arg2: memref<32x128xf32, #tpu.memory_space<vmem>>, %arg3: memref<1x128xf32, #tpu.memory_space<vmem>>, %arg4: memref<128x128xf32, #tpu.memory_space<vmem>>, %arg5: memref<1x128xf32, #tpu.memory_space<vmem>>, %arg6: memref<128x128xf32, #tpu.memory_space<vmem>>, %arg7: memref<1x128xf32, #tpu.memory_space<vmem>>, %arg8: memref<8x128xf32, #tpu.memory_space<vmem>>) attributes {dimension_semantics = [#tpu.dimension_semantics<parallel>], iteration_bounds = array<i64: 1>, scalar_prefetch = 0 : i64, scratch_operands = 0 : i64, tpu.core_type = #tpu.core_type<tc>, window_params = [{transform_indices = @transform_0, window_bounds = array<i64: 8, 32>}, {pipeline_mode = #tpu.pipeline_mode<synchronous>, transform_indices = @transform_1, window_bounds = array<i64: 32, 128>}, {pipeline_mode = #tpu.pipeline_mode<synchronous>, transform_indices = @transform_2, window_bounds = array<i64: 1, 128>}, {pipeline_mode = #tpu.pipeline_mode<synchronous>, transform_indices = @transform_3, window_bounds = array<i64: 128, 128>}, {pipeline_mode = #tpu.pipeline_mode<synchronous>, transform_indices = @transform_4, window_bounds = array<i64: 1, 128>}, {pipeline_mode = #tpu.pipeline_mode<synchronous>, transform_indices = @transform_5, window_bounds = array<i64: 128, 128>}, {pipeline_mode = #tpu.pipeline_mode<synchronous>, transform_indices = @transform_6, window_bounds = array<i64: 1, 128>}, {transform_indices = @transform_7, window_bounds = array<i64: 8, 128>}]} {
    %c0 = arith.constant 0 : index
    %c0_0 = arith.constant 0 : index
    %0 = vector.load %arg1[%c0, %c0_0] : memref<8x32xf32, #tpu.memory_space<vmem>>, vector<8x32xf32>
    %c0_1 = arith.constant 0 : index
    %c0_2 = arith.constant 0 : index
    %1 = vector.load %arg2[%c0_1, %c0_2] : memref<32x128xf32, #tpu.memory_space<vmem>>, vector<32x128xf32>
    %c0_3 = arith.constant 0 : index
    %c0_4 = arith.constant 0 : index
    %2 = vector.load %arg3[%c0_3, %c0_4] : memref<1x128xf32, #tpu.memory_space<vmem>>, vector<1x128xf32>
    %cst = arith.constant dense<0.000000e+00> : vector<8x128xf32>
    %3 = tpu.matmul %0, %1, %cst {dimension_numbers = #tpu.dot_dimension_numbers<[1], [0], [0], [1], [0, 0, 1, 1], [], []>} : vector<8x32xf32>, vector<32x128xf32>, vector<8x128xf32> -> vector<8x128xf32>
    %4 = vector.broadcast %2 : vector<1x128xf32> to vector<8x128xf32>
    %5 = arith.addf %3, %4 : vector<8x128xf32>
    %cst_5 = arith.constant 0.000000e+00 : f32
    %6 = vector.broadcast %cst_5 : f32 to vector<8x128xf32>
    %7 = arith.cmpf oge, %5, %6 : vector<8x128xf32>
    %cst_6 = arith.constant 2.000000e-01 : f32
    %8 = vector.broadcast %cst_6 : f32 to vector<8x128xf32>
    %9 = arith.mulf %8, %5 : vector<8x128xf32>
    %10 = arith.select %7, %5, %9 : vector<8x128xi1>, vector<8x128xf32>
    %c0_7 = arith.constant 0 : index
    %c0_8 = arith.constant 0 : index
    %11 = vector.load %arg4[%c0_7, %c0_8] : memref<128x128xf32, #tpu.memory_space<vmem>>, vector<128x128xf32>
    %c0_9 = arith.constant 0 : index
    %c0_10 = arith.constant 0 : index
    %12 = vector.load %arg5[%c0_9, %c0_10] : memref<1x128xf32, #tpu.memory_space<vmem>>, vector<1x128xf32>
    %cst_11 = arith.constant dense<0.000000e+00> : vector<8x128xf32>
    %13 = tpu.matmul %10, %11, %cst_11 {dimension_numbers = #tpu.dot_dimension_numbers<[1], [0], [0], [1], [0, 0, 1, 1], [], []>} : vector<8x128xf32>, vector<128x128xf32>, vector<8x128xf32> -> vector<8x128xf32>
    %14 = vector.broadcast %12 : vector<1x128xf32> to vector<8x128xf32>
    %15 = arith.addf %13, %14 : vector<8x128xf32>
    %cst_12 = arith.constant 0.000000e+00 : f32
    %16 = vector.broadcast %cst_12 : f32 to vector<8x128xf32>
    %17 = arith.cmpf oge, %15, %16 : vector<8x128xf32>
    %cst_13 = arith.constant 2.000000e-01 : f32
    %18 = vector.broadcast %cst_13 : f32 to vector<8x128xf32>
    %19 = arith.mulf %18, %15 : vector<8x128xf32>
    %20 = arith.select %17, %15, %19 : vector<8x128xi1>, vector<8x128xf32>
    %c0_14 = arith.constant 0 : index
    %c0_15 = arith.constant 0 : index
    %21 = vector.load %arg6[%c0_14, %c0_15] : memref<128x128xf32, #tpu.memory_space<vmem>>, vector<128x128xf32>
    %c0_16 = arith.constant 0 : index
    %c0_17 = arith.constant 0 : index
    %22 = vector.load %arg7[%c0_16, %c0_17] : memref<1x128xf32, #tpu.memory_space<vmem>>, vector<1x128xf32>
    %cst_18 = arith.constant dense<0.000000e+00> : vector<8x128xf32>
    %23 = tpu.matmul %20, %21, %cst_18 {dimension_numbers = #tpu.dot_dimension_numbers<[1], [0], [0], [1], [0, 0, 1, 1], [], []>} : vector<8x128xf32>, vector<128x128xf32>, vector<8x128xf32> -> vector<8x128xf32>
    %24 = vector.broadcast %22 : vector<1x128xf32> to vector<8x128xf32>
    %25 = arith.addf %23, %24 : vector<8x128xf32>
    %c0_19 = arith.constant 0 : index
    %c0_20 = arith.constant 0 : index
    %26 = vector.load %arg8[%c0_19, %c0_20] : memref<8x128xf32, #tpu.memory_space<vmem>>, vector<8x128xf32>
    tpu.vector_store %arg8[%c0_19, %c0_20], %25 {strides = array<i32>} : memref<8x128xf32, #tpu.memory_space<vmem>>, vector<8x128xf32>,
    return
  }
  func.func @transform_0(%arg0: i32) -> (i32, i32) {
    %c0_i32 = arith.constant 0 : i32
    %c0_i32_0 = arith.constant 0 : i32
    return %arg0, %c0_i32 : i32, i32
  }
  func.func @transform_1(%arg0: i32) -> (i32, i32) {
    %c0_i32 = arith.constant 0 : i32
    %c0_i32_0 = arith.constant 0 : i32
    %c0_i32_1 = arith.constant 0 : i32
    return %c0_i32, %c0_i32_0 : i32, i32
  }
  func.func @transform_2(%arg0: i32) -> (i32, i32) {
    %c0_i32 = arith.constant 0 : i32
    %c0_i32_0 = arith.constant 0 : i32
    %c0_i32_1 = arith.constant 0 : i32
    return %c0_i32, %c0_i32_0 : i32, i32
  }
  func.func @transform_3(%arg0: i32) -> (i32, i32) {
    %c0_i32 = arith.constant 0 : i32
    %c0_i32_0 = arith.constant 0 : i32
    %c0_i32_1 = arith.constant 0 : i32
    return %c0_i32, %c0_i32_0 : i32, i32
  }
  func.func @transform_4(%arg0: i32) -> (i32, i32) {
    %c0_i32 = arith.constant 0 : i32
    %c0_i32_0 = arith.constant 0 : i32
    %c0_i32_1 = arith.constant 0 : i32
    return %c0_i32, %c0_i32_0 : i32, i32
  }
  func.func @transform_5(%arg0: i32) -> (i32, i32) {
    %c0_i32 = arith.constant 0 : i32
    %c0_i32_0 = arith.constant 0 : i32
    %c0_i32_1 = arith.constant 0 : i32
    return %c0_i32, %c0_i32_0 : i32, i32
  }
  func.func @transform_6(%arg0: i32) -> (i32, i32) {
    %c0_i32 = arith.constant 0 : i32
    %c0_i32_0 = arith.constant 0 : i32
    %c0_i32_1 = arith.constant 0 : i32
    return %c0_i32, %c0_i32_0 : i32, i32
  }
  func.func @transform_7(%arg0: i32) -> (i32, i32) {
    %c0_i32 = arith.constant 0 : i32
    %c0_i32_0 = arith.constant 0 : i32
    return %arg0, %c0_i32 : i32, i32
  }
}

</mosaic_0001>

<bundles_post_ra>
// kernel: tpu_custom_call.1
= control target key start
LH: loop header
LB: loop body
LE: loop exit
PB: predicated region body
PF: predicated region fallthrough
CT: control target
= control target key end

     0   :  { %12 = vsyncpa [#allocation3], 0  ;;  %s831_s0 = inlined_call_operand.hbm [shape: f32[8,32], index: 0, kind: input, shape index: {}]   ;;  %s832_s1 = inlined_call_operand.hbm [shape: f32[32,128], index: 1, kind: input, shape index: {}]   ;;  %s833_s2 = inlined_call_operand.vmem [shape: f32[1,128], index: 2, kind: input, shape index: {}]   ;;  %s834_s3 = inlined_call_operand.hbm [shape: f32[128,128], index: 3, kind: input, shape index: {}]   ;;  %s835_s4 = inlined_call_operand.vmem [shape: f32[1,128], index: 4, kind: input, shape index: {}]   ;;  %s836_s5 = inlined_call_operand.hbm [shape: f32[128,128], index: 5, kind: input, shape index: {}]   ;;  %s837_s6 = inlined_call_operand.vmem [shape: f32[1,128], index: 6, kind: input, shape index: {}]   ;;  %s838_s7 = inlined_call_operand.hbm [shape: f32[8,128], index: 7, kind: output, shape index: {}]  }
   0x1   :  { %13 = vsyncpa [#allocation6], 0 }
   0x2   :  { %14 = vsyncpa [#allocation9], 0 }
   0x3   :  { %15 = vsyncpa [#allocation4], 0  ;;  %s682_s24 = smov [#allocation5]   ;;  %s564_s28 = scalar_lea.hbm %s832_s1, 512 }
   0x4   :  { %s31_s25 = sshll.u32 %s682_s24, 4  ;;  %p565_p0 = scmp.ne.s32.totalorder %s832_s1, %s564_s28  ;;  %s32_s25 = int_to_ptr.vmem [resolvable:$true] %s31_s25 }
   0x5   :  { %p568_p1 = scmp.lt.u32.totalorder %s564_s28, %s832_s1 }
   0x7   :  { %p570_p2 = pnand %p568_p1, %p565_p0 }
   0x9   :  { %573 = shalt.err (!%p570_p2)
}
   0xa   :  { %s574_s10 = scalar_lea.vmem %s32_s25, 512  ;;  %p579_p4 = scmp.lt.s32.totalorder %s32_s25, %s32_s25 }
   0xb   :  { %p575_p3 = scmp.ne.s32.totalorder %s32_s25, %s574_s10  ;;  %p580_p5 = scmp.lt.s32.totalorder %s574_s10, %s574_s10 }
   0xd   :  { %p581_p6 = por %p580_p5, %p579_p4 }
   0xf   :  { %p582_p7 = pnand %p581_p6, %p575_p3 }
  0x11   :  { %585 = shalt.err (!%p582_p7)
}
  0x12   :  { %s683_s11 = smov 128   ;;  %s684_s12 = smov 8  }
  0x13   :  { %37 = dma.hbm_to_vmem [thread:$0]  %s832_s1, 512, %s32_s25, [#allocation6], %s683_s11, %s683_s11, %s684_s12  }
  0x14   :  { %s685_s15 = smov [#allocation2]   ;;  %s686_s17 = smov [#allocation7]  }
  0x15   :  { %s22_s16 = sshll.u32 %s685_s15, 4  ;;  %s45_s18 = sshll.u32 %s686_s17, 4  ;;  %s23_s16 = int_to_ptr.vmem [resolvable:$true] %s22_s16  ;;  %s46_s18 = int_to_ptr.vmem [resolvable:$true] %s45_s18 }
  0x16   :  { %s586_s21 = scalar_lea.hbm %s831_s0, 128 }
  0x17   :  { %p587_p8 = scmp.ne.s32.totalorder %s831_s0, %s586_s21  ;;  %p590_p9 = scmp.lt.u32.totalorder %s586_s21, %s831_s0 }
  0x19   :  { %p592_p10 = pnand %p590_p9, %p587_p8 }
  0x1b   :  { %595 = shalt.err (!%p592_p10)
}
  0x1c   :  { %s596_s1 = scalar_lea.vmem %s23_s16, 128  ;;  %p601_p12 = scmp.lt.s32.totalorder %s23_s16, %s23_s16 }
  0x1d   :  { %p597_p11 = scmp.ne.s32.totalorder %s23_s16, %s596_s1  ;;  %p602_p13 = scmp.lt.s32.totalorder %s596_s1, %s596_s1 }
  0x1f   :  { %p603_p0 = por %p602_p13, %p601_p12 }
  0x21   :  { %p604_p1 = pnand %p603_p0, %p597_p11 }
  0x23   :  { %607 = shalt.err (!%p604_p1)
}
  0x24   :  { %25 = dma.hbm_to_vmem [thread:$0]  %s831_s0, 128, %s23_s16, [#allocation3]  }
  0x25   :  { %s608_s30 = scalar_lea.hbm %s834_s3, 2048 }
  0x26   :  { %p609_p2 = scmp.ne.s32.totalorder %s834_s3, %s608_s30  ;;  %p612_p3 = scmp.lt.u32.totalorder %s608_s30, %s834_s3 }
  0x28   :  { %p614_p4 = pnand %p612_p3, %p609_p2 }
  0x2a   :  { %617 = shalt.err (!%p614_p4)
}
  0x2b   :  { %s618_s14 = scalar_lea.vmem %s46_s18, 2048  ;;  %p623_p6 = scmp.lt.s32.totalorder %s46_s18, %s46_s18 }
  0x2c   :  { %p619_p5 = scmp.ne.s32.totalorder %s46_s18, %s618_s14  ;;  %p624_p7 = scmp.lt.s32.totalorder %s618_s14, %s618_s14 }
  0x2e   :  { %p625_p8 = por %p624_p7, %p623_p6 }
  0x30   :  { %p626_p9 = pnand %p625_p8, %p619_p5 }
  0x32   :  { %629 = shalt.err (!%p626_p9)
}
  0x33   :  { %51 = dma.hbm_to_vmem [thread:$0]  %s834_s3, 2048, %s46_s18, [#allocation6], %s683_s11, %s683_s11, %s684_s12  }
  0x34   :  { %s687_s16 = smov [#allocation8]   ;;  %s630_s21 = scalar_lea.hbm %s836_s5, 2048 }
  0x35   :  { %s59_s17 = sshll.u32 %s687_s16, 4  ;;  %p631_p10 = scmp.ne.s32.totalorder %s836_s5, %s630_s21  ;;  %s60_s17 = int_to_ptr.vmem [resolvable:$true] %s59_s17 }
  0x36   :  { %p634_p11 = scmp.lt.u32.totalorder %s630_s21, %s836_s5 }
  0x38   :  { %p636_p12 = pnand %p634_p11, %p631_p10 }
  0x3a   :  { %639 = shalt.err (!%p636_p12)
}
  0x3b   :  { %s640_s1 = scalar_lea.vmem %s60_s17, 2048  ;;  %p645_p0 = scmp.lt.s32.totalorder %s60_s17, %s60_s17 }
  0x3c   :  { %p641_p13 = scmp.ne.s32.totalorder %s60_s17, %s640_s1  ;;  %p646_p1 = scmp.lt.s32.totalorder %s640_s1, %s640_s1 }
  0x3e   :  { %p647_p2 = por %p646_p1, %p645_p0 }
  0x40   :  { %p648_p3 = pnand %p647_p2, %p641_p13 }
  0x42   :  { %651 = shalt.err (!%p648_p3)
}
  0x43   :  { %65 = dma.hbm_to_vmem [thread:$0]  %s836_s5, 2048, %s60_s17, [#allocation9], %s683_s11, %s683_s11, %s684_s12  }
  0x44   :  { %674 = dma.done.wait [#allocation3], 128  }
  0x45   :  { %675 = vsyncadd [#allocation3], 4294967168 }
  0x46   :  { %676 = dma.done.wait [#allocation6], 2560  }
  0x47   :  { %677 = vsyncadd [#allocation6], 4294964736 }
  0x48   :  { %678 = dma.done.wait [#allocation9], 2048  }
  0x49   :  { %679 = vsyncadd [#allocation9], 4294965248  ;;  %v688_v0 = vmov 0.0|0.0   ;;  %vm689_vm0 = vmmov 0   ;;  %v690_v1 = vmov 0.0   ;;  %v81_v2 = vld [vmem:[#allocation5] sm:$0xff] }
  0x4a   :  { %500 = vmatprep.subr.bf16.mxu0 %v688_v0  ;;  %427 = vmatprep.mubr.msk.f32.mxu0 %vm689_vm0, %v690_v1  ;;  %v82_v3 = vld [vmem:[#allocation5 + $0x8] sm:$0xff]  ;;  %v83_v4 = vld [vmem:[#allocation5 + $0x10] sm:$0xff]  ;;  %v84_v6 = vld [vmem:[#allocation5 + $0x18] sm:$0xff]  ;;  %vm92_vm1 = vcmask 261120   ;;  %s691_s28 = smov [#allocation10]  }
  0x4b   :  { %506 = vmatprep.subr.bf16.mxu1 %v688_v0  ;;  %462 = vmatprep.mubr.msk.f32.mxu1 %vm689_vm0, %v690_v1  ;;  %v501_v5 = vpack.c.bf16 %v82_v3, %v81_v2  ;;  %v169_v7 = vld [vmem:[#allocation7] sm:$0xff]  ;;  %v170_v8 = vld [vmem:[#allocation7 + $0x8] sm:$0xff]  ;;  %v171_v9 = vld [vmem:[#allocation7 + $0x10] sm:$0xff]  ;;  %v504_v11 = vpack.c.bf16 %v84_v6, %v83_v4  ;;  %s365_s29 = sshll.u32 %s691_s28, 4  ;;  %s366_s29 = int_to_ptr.vmem [resolvable:$true] %s365_s29 }
  0x4c   :  { %v172_v10 = vld [vmem:[#allocation7 + $0x18] sm:$0xff]  ;;  %v507_v12 = vpack.c.bf16 %v170_v8, %v169_v7  ;;  %v173_v14 = vld [vmem:[#allocation7 + $0x20] sm:$0xff]  ;;  %v174_v15 = vld [vmem:[#allocation7 + $0x28] sm:$0xff]  ;;  %s652_s30 = scalar_lea.vmem %s366_s29, 128  ;;  %p657_p5 = scmp.lt.s32.totalorder %s366_s29, %s366_s29 }
  0x4d   :  { %502 = vmatpush3.bf16.msra.mxu0 %v501_v5  ;;  %v510_v13 = vpack.c.bf16 %v172_v10, %v171_v9  ;;  %v80_v16 = vld [vmem:[#allocation2] sm:$0xff]  ;;  %v513_v17 = vpack.c.bf16 %v174_v15, %v173_v14  ;;  %v175_v18 = vld [vmem:[#allocation7 + $0x30] sm:$0xff]  ;;  %v177_v21 = vld [vmem:[#allocation7 + $0x40] sm:$0xff]  ;;  %p653_p4 = scmp.ne.s32.totalorder %s366_s29, %s652_s30  ;;  %p658_p6 = scmp.lt.s32.totalorder %s652_s30, %s652_s30 }
  0x4e   :  { %503 = vmatprep.subr.bf16.mxu0 %v688_v0  ;;  %508 = vmatpush3.bf16.msra.mxu1 %v507_v12  ;;  %v176_v19 = vld [vmem:[#allocation7 + $0x38] sm:$0xff]  ;;  %v178_v22 = vld [vmem:[#allocation7 + $0x48] sm:$0xff]  ;;  %v179_v24 = vld [vmem:[#allocation7 + $0x50] sm:$0xff] }
  0x4f   :  { %509 = vmatprep.subr.bf16.mxu1 %v688_v0  ;;  %v516_v20 = vpack.c.bf16 %v176_v19, %v175_v18  ;;  %v519_v23 = vpack.c.bf16 %v178_v22, %v177_v21  ;;  %v180_v25 = vld [vmem:[#allocation7 + $0x58] sm:$0xff]  ;;  %v181_v27 = vld [vmem:[#allocation7 + $0x60] sm:$0xff]  ;;  %v182_v28 = vld [vmem:[#allocation7 + $0x68] sm:$0xff]  ;;  %p659_p7 = por %p658_p6, %p657_p5 }
  0x50   :  { %v522_v26 = vpack.c.bf16 %v180_v25, %v179_v24  ;;  %v525_v29 = vpack.c.bf16 %v182_v28, %v181_v27  ;;  %v183_v30 = vld [vmem:[#allocation7 + $0x70] sm:$0xff]  ;;  %v184_v31 = vld [vmem:[#allocation7 + $0x78] sm:$0xff]  ;;  %v265_v33 = vld [vmem:[#allocation8] sm:$0xff] }
  0x51   :  { %505 = vmatpush3.bf16.msra.mxu0 %v504_v11  ;;  %v528_v32 = vpack.c.bf16 %v184_v31, %v183_v30  ;;  %v266_v34 = vld [vmem:[#allocation8 + $0x8] sm:$0xff]  ;;  %v267_v35 = vld [vmem:[#allocation8 + $0x10] sm:$0xff]  ;;  %v268_v37 = vld [vmem:[#allocation8 + $0x18] sm:$0xff]  ;;  %p660_p8 = pnand %p659_p7, %p653_p4 }
  0x52   :  { %530 = vmatprep.subr.bf16.mxu0 %v688_v0  ;;  %511 = vmatpush3.bf16.msra.mxu1 %v510_v13  ;;  %v531_v36 = vpack.c.bf16 %v266_v34, %v265_v33  ;;  %v534_v38 = vpack.c.bf16 %v268_v37, %v267_v35  ;;  %v269_v39 = vld [vmem:[#allocation8 + $0x20] sm:$0xff]  ;;  %v270_v40 = vld [vmem:[#allocation8 + $0x28] sm:$0xff]  ;;  %v271_v42 = vld [vmem:[#allocation8 + $0x30] sm:$0xff] }
  0x53   :  { %512 = vmatprep.subr.bf16.mxu1 %v688_v0  ;;  %v537_v41 = vpack.c.bf16 %v270_v40, %v269_v39  ;;  %v272_v43 = vld [vmem:[#allocation8 + $0x38] sm:$0xff]  ;;  %v273_v45 = vld [vmem:[#allocation8 + $0x40] sm:$0xff]  ;;  %v274_v46 = vld [vmem:[#allocation8 + $0x48] sm:$0xff] }
  0x54   :  { %428 = vmatmul.mubr.msk.f32.vlgmr.msra.gmra.mrb[0].mxu0 %vm92_vm1, %v80_v16  ;;  %v540_v44 = vpack.c.bf16 %v272_v43, %v271_v42  ;;  %v543_v47 = vpack.c.bf16 %v274_v46, %v273_v45  ;;  %v275_v48 = vld [vmem:[#allocation8 + $0x50] sm:$0xff]  ;;  %v276_v49 = vld [vmem:[#allocation8 + $0x58] sm:$0xff]  ;;  %v277_v51 = vld [vmem:[#allocation8 + $0x60] sm:$0xff] }
  0x55   :  { %497 = vmatprep.mubr.msk.f32.mxu0 %vm689_vm0, %v690_v1  ;;  %532 = vmatpush3.bf16.msra.mxu0 %v531_v36  ;;  %v546_v50 = vpack.c.bf16 %v276_v49, %v275_v48  ;;  %v278_v52 = vld [vmem:[#allocation8 + $0x68] sm:$0xff]  ;;  %v376_v54 = vld [vmem:[%s833_s2] ss:$0 sm:$0xff]  ;;  %v279_v60 = vld [vmem:[#allocation8 + $0x70] sm:$0xff] }
  0x56   :  { %514 = vmatpush3.bf16.msra.mxu1 %v513_v17  ;;  %533 = vmatprep.subr.bf16.mxu0 %v688_v0  ;;  %v549_v53 = vpack.c.bf16 %v278_v52, %v277_v51  ;;  %v280_v61 = vld [vmem:[#allocation8 + $0x78] sm:$0xff] }
  0x57   :  { %515 = vmatprep.subr.bf16.mxu1 %v688_v0  ;;  %v552_v62 = vpack.c.bf16 %v280_v61, %v279_v60  ;;  %v378_v63 = vld [vmem:[%s835_s4] ss:$0 sm:$0xff] }
  0x58   :  { %v379_v5 = vld [vmem:[%s837_s6] ss:$0 sm:$0xff] }
  0x59   :  { %535 = vmatpush3.bf16.msra.mxu0 %v534_v38 }
  0x5a   :  { %517 = vmatpush3.bf16.msra.mxu1 %v516_v20  ;;  %536 = vmatprep.subr.bf16.mxu0 %v688_v0 }
  0x5b   :  { %518 = vmatprep.subr.bf16.mxu1 %v688_v0 }
  0x5d   :  { %538 = vmatpush3.bf16.msra.mxu0 %v537_v41 }
  0x5e   :  { %520 = vmatpush3.bf16.msra.mxu1 %v519_v23  ;;  %539 = vmatprep.subr.bf16.mxu0 %v688_v0 }
  0x5f   :  { %521 = vmatprep.subr.bf16.mxu1 %v688_v0 }
  0x61   :  { %541 = vmatpush3.bf16.msra.mxu0 %v540_v44 }
  0x62   :  { %523 = vmatpush3.bf16.msra.mxu1 %v522_v26  ;;  %542 = vmatprep.subr.bf16.mxu0 %v688_v0 }
  0x63   :  { %524 = vmatprep.subr.bf16.mxu1 %v688_v0 }
  0x65   :  { %544 = vmatpush3.bf16.msra.mxu0 %v543_v47 }
  0x66   :  { %526 = vmatpush3.bf16.msra.mxu1 %v525_v29  ;;  %545 = vmatprep.subr.bf16.mxu0 %v688_v0 }
  0x67   :  { %527 = vmatprep.subr.bf16.mxu1 %v688_v0 }
  0x69   :  { %547 = vmatpush3.bf16.msra.mxu0 %v546_v50 }
  0x6a   :  { %529 = vmatpush3.bf16.msra.mxu1 %v528_v32  ;;  %548 = vmatprep.subr.bf16.mxu0 %v688_v0 }
  0x6d   :  { %550 = vmatpush3.bf16.msra.mxu0 %v549_v53 }
  0x6e   :  { %551 = vmatprep.subr.bf16.mxu0 %v688_v0 }
  0x71   :  { %553 = vmatpush3.bf16.msra.mxu0 %v552_v62 }
 0x127   :  { %v162_v55 = vpop.f32.mrb[0].mxu0 }
 0x128   :  { %v163_v56 = vadd.f32 %v376_v54, %v162_v55  ;;  %v429_v57 = vpop.f32.mrb[1].mxu0 }
 0x12a   :  { %v167_v58 = vmul.f32 0.2, %v163_v56  ;;  %vm166_vm2 = vcmp.ge.f32.partialorder %v163_v56, 0.0 }
 0x12c   :  { %v168_v59 = vsel %vm166_vm2, %v163_v56, %v167_v58 }
 0x12d   :  { %463 = vmatmul.mubr.f32.vlgmr.msra.gmra.mrb[0].mxu1 %v168_v59 }
 0x200   :  { %v258_v0 = vpop.f32.mrb[0].mxu1 }
 0x201   :  { %v259_v1 = vadd.f32 %v378_v63, %v258_v0  ;;  %v464_v2 = vpop.f32.mrb[1].mxu1 }
 0x203   :  { %vm262_vm3 = vcmp.ge.f32.partialorder %v259_v1, 0.0  ;;  %v263_v3 = vmul.f32 0.2, %v259_v1 }
 0x205   :  { %v264_v4 = vsel %vm262_vm3, %v259_v1, %v263_v3 }
 0x206   :  { %498 = vmatmul.mubr.f32.vlgmr.msra.gmra.mrb[2].mxu0 %v264_v4 }
 0x2d9   :  { %v354_v6 = vpop.f32.mrb[2].mxu0 }
 0x2da   :  { %v355_v7 = vadd.f32 %v379_v5, %v354_v6  ;;  %v499_v8 = vpop.f32.mrb[3].mxu0 }
 0x2dc   :  { %358 = vst [vmem:[#allocation10] sm:$0xff] %v355_v7 }
 0x2dd   :  { %663 = shalt.err (!%p660_p8)
}
 0x2de   :  { %s664_s9 = scalar_lea.hbm %s838_s7, 128 }
 0x2df   :  { %p665_p9 = scmp.ne.s32.totalorder %s838_s7, %s664_s9  ;;  %p668_p10 = scmp.lt.u32.totalorder %s664_s9, %s838_s7 }
 0x2e1   :  { %p670_p11 = pnand %p668_p10, %p665_p9 }
 0x2e3   :  { %673 = shalt.err (!%p670_p11)
}
 0x2e4   :  { %368 = dma.vmem_to_hbm [thread:$0]  %s366_s29, 128, %s838_s7, [#allocation4]  }
 0x2e5   :  { %680 = dma.done.wait [#allocation4], 128  }
 0x2e6   :  { %681 = vsyncadd [#allocation4], 4294967168 }
 0x2e7   :  { %372 = vsyncpa [#allocation3], 1 }
 0x2e8   :  { %373 = vsyncpa [#allocation6], 1 }
 0x2e9   :  { %374 = vsyncpa [#allocation9], 1 }
 0x2ea   :  { %375 = vsyncpa [#allocation4], 1 }

// kernel: tpu_custom_call.1
= control target key start
LH: loop header
LB: loop body
LE: loop exit
PB: predicated region body
PF: predicated region fallthrough
CT: control target
= control target key end

     0   :  { %12 = vsyncpa [#allocation3], 0  ;;  %s831_s0 = inlined_call_operand.hbm [shape: f32[8,32], index: 0, kind: input, shape index: {}]   ;;  %s832_s1 = inlined_call_operand.hbm [shape: f32[32,128], index: 1, kind: input, shape index: {}]   ;;  %s833_s2 = inlined_call_operand.vmem [shape: f32[1,128], index: 2, kind: input, shape index: {}]   ;;  %s834_s3 = inlined_call_operand.hbm [shape: f32[128,128], index: 3, kind: input, shape index: {}]   ;;  %s835_s4 = inlined_call_operand.vmem [shape: f32[1,128], index: 4, kind: input, shape index: {}]   ;;  %s836_s5 = inlined_call_operand.hbm [shape: f32[128,128], index: 5, kind: input, shape index: {}]   ;;  %s837_s6 = inlined_call_operand.vmem [shape: f32[1,128], index: 6, kind: input, shape index: {}]   ;;  %s838_s7 = inlined_call_operand.hbm [shape: f32[8,128], index: 7, kind: output, shape index: {}]  }
   0x1   :  { %13 = vsyncpa [#allocation6], 0 }
   0x2   :  { %14 = vsyncpa [#allocation9], 0 }
   0x3   :  { %15 = vsyncpa [#allocation4], 0  ;;  %s682_s24 = smov [#allocation5]   ;;  %s564_s28 = scalar_lea.hbm %s832_s1, 512 }
   0x4   :  { %s31_s25 = sshll.u32 %s682_s24, 4  ;;  %p565_p0 = scmp.ne.s32.totalorder %s832_s1, %s564_s28  ;;  %s32_s25 = int_to_ptr.vmem [resolvable:$true] %s31_s25 }
   0x5   :  { %p568_p1 = scmp.lt.u32.totalorder %s564_s28, %s832_s1 }
   0x7   :  { %p570_p2 = pnand %p568_p1, %p565_p0 }
   0x9   :  { %573 = shalt.err (!%p570_p2)
}
   0xa   :  { %s574_s10 = scalar_lea.vmem %s32_s25, 512  ;;  %p579_p4 = scmp.lt.s32.totalorder %s32_s25, %s32_s25 }
   0xb   :  { %p575_p3 = scmp.ne.s32.totalorder %s32_s25, %s574_s10  ;;  %p580_p5 = scmp.lt.s32.totalorder %s574_s10, %s574_s10 }
   0xd   :  { %p581_p6 = por %p580_p5, %p579_p4 }
   0xf   :  { %p582_p7 = pnand %p581_p6, %p575_p3 }
  0x11   :  { %585 = shalt.err (!%p582_p7)
}
  0x12   :  { %s683_s11 = smov 128   ;;  %s684_s12 = smov 8  }
  0x13   :  { %37 = dma.hbm_to_vmem [thread:$0]  %s832_s1, 512, %s32_s25, [#allocation6], %s683_s11, %s683_s11, %s684_s12  }
  0x14   :  { %s685_s15 = smov [#allocation2]   ;;  %s686_s17 = smov [#allocation7]  }
  0x15   :  { %s22_s16 = sshll.u32 %s685_s15, 4  ;;  %s45_s18 = sshll.u32 %s686_s17, 4  ;;  %s23_s16 = int_to_ptr.vmem [resolvable:$true] %s22_s16  ;;  %s46_s18 = int_to_ptr.vmem [resolvable:$true] %s45_s18 }
  0x16   :  { %s586_s21 = scalar_lea.hbm %s831_s0, 128 }
  0x17   :  { %p587_p8 = scmp.ne.s32.totalorder %s831_s0, %s586_s21  ;;  %p590_p9 = scmp.lt.u32.totalorder %s586_s21, %s831_s0 }
  0x19   :  { %p592_p10 = pnand %p590_p9, %p587_p8 }
  0x1b   :  { %595 = shalt.err (!%p592_p10)
}
  0x1c   :  { %s596_s1 = scalar_lea.vmem %s23_s16, 128  ;;  %p601_p12 = scmp.lt.s32.totalorder %s23_s16, %s23_s16 }
  0x1d   :  { %p597_p11 = scmp.ne.s32.totalorder %s23_s16, %s596_s1  ;;  %p602_p13 = scmp.lt.s32.totalorder %s596_s1, %s596_s1 }
  0x1f   :  { %p603_p0 = por %p602_p13, %p601_p12 }
  0x21   :  { %p604_p1 = pnand %p603_p0, %p597_p11 }
  0x23   :  { %607 = shalt.err (!%p604_p1)
}
  0x24   :  { %25 = dma.hbm_to_vmem [thread:$0]  %s831_s0, 128, %s23_s16, [#allocation3]  }
  0x25   :  { %s608_s30 = scalar_lea.hbm %s834_s3, 2048 }
  0x26   :  { %p609_p2 = scmp.ne.s32.totalorder %s834_s3, %s608_s30  ;;  %p612_p3 = scmp.lt.u32.totalorder %s608_s30, %s834_s3 }
  0x28   :  { %p614_p4 = pnand %p612_p3, %p609_p2 }
  0x2a   :  { %617 = shalt.err (!%p614_p4)
}
  0x2b   :  { %s618_s14 = scalar_lea.vmem %s46_s18, 2048  ;;  %p623_p6 = scmp.lt.s32.totalorder %s46_s18, %s46_s18 }
  0x2c   :  { %p619_p5 = scmp.ne.s32.totalorder %s46_s18, %s618_s14  ;;  %p624_p7 = scmp.lt.s32.totalorder %s618_s14, %s618_s14 }
  0x2e   :  { %p625_p8 = por %p624_p7, %p623_p6 }
  0x30   :  { %p626_p9 = pnand %p625_p8, %p619_p5 }
  0x32   :  { %629 = shalt.err (!%p626_p9)
}
  0x33   :  { %51 = dma.hbm_to_vmem [thread:$0]  %s834_s3, 2048, %s46_s18, [#allocation6], %s683_s11, %s683_s11, %s684_s12  }
  0x34   :  { %s687_s16 = smov [#allocation8]   ;;  %s630_s21 = scalar_lea.hbm %s836_s5, 2048 }
  0x35   :  { %s59_s17 = sshll.u32 %s687_s16, 4  ;;  %p631_p10 = scmp.ne.s32.totalorder %s836_s5, %s630_s21  ;;  %s60_s17 = int_to_ptr.vmem [resolvable:$true] %s59_s17 }
  0x36   :  { %p634_p11 = scmp.lt.u32.totalorder %s630_s21, %s836_s5 }
  0x38   :  { %p636_p12 = pnand %p634_p11, %p631_p10 }
  0x3a   :  { %639 = shalt.err (!%p636_p12)
}
  0x3b   :  { %s640_s1 = scalar_lea.vmem %s60_s17, 2048  ;;  %p645_p0 = scmp.lt.s32.totalorder %s60_s17, %s60_s17 }
  0x3c   :  { %p641_p13 = scmp.ne.s32.totalorder %s60_s17, %s640_s1  ;;  %p646_p1 = scmp.lt.s32.totalorder %s640_s1, %s640_s1 }
  0x3e   :  { %p647_p2 = por %p646_p1, %p645_p0 }
  0x40   :  { %p648_p3 = pnand %p647_p2, %p641_p13 }
  0x42   :  { %651 = shalt.err (!%p648_p3)
}
  0x43   :  { %65 = dma.hbm_to_vmem [thread:$0]  %s836_s5, 2048, %s60_s17, [#allocation9], %s683_s11, %s683_s11, %s684_s12  }
  0x44   :  { %674 = dma.done.wait [#allocation3], 128  }
  0x45   :  { %675 = vsyncadd [#allocation3], 4294967168 }
  0x46   :  { %676 = dma.done.wait [#allocation6], 2560  }
  0x47   :  { %677 = vsyncadd [#allocation6], 4294964736 }
  0x48   :  { %678 = dma.done.wait [#allocation9], 2048  }
  0x49   :  { %679 = vsyncadd [#allocation9], 4294965248  ;;  %v688_v0 = vmov 0.0|0.0   ;;  %vm689_vm0 = vmmov 0   ;;  %v690_v1 = vmov 0.0   ;;  %v81_v2 = vld [vmem:[#allocation5] sm:$0xff] }
  0x4a   :  { %500 = vmatprep.subr.bf16.mxu0 %v688_v0  ;;  %427 = vmatprep.mubr.msk.f32.mxu0 %vm689_vm0, %v690_v1  ;;  %v82_v3 = vld [vmem:[#allocation5 + $0x8] sm:$0xff]  ;;  %v83_v4 = vld [vmem:[#allocation5 + $0x10] sm:$0xff]  ;;  %v84_v6 = vld [vmem:[#allocation5 + $0x18] sm:$0xff]  ;;  %vm92_vm1 = vcmask 261120   ;;  %s691_s28 = smov [#allocation10]  }
  0x4b   :  { %506 = vmatprep.subr.bf16.mxu1 %v688_v0  ;;  %462 = vmatprep.mubr.msk.f32.mxu1 %vm689_vm0, %v690_v1  ;;  %v501_v5 = vpack.c.bf16 %v82_v3, %v81_v2  ;;  %v169_v7 = vld [vmem:[#allocation7] sm:$0xff]  ;;  %v170_v8 = vld [vmem:[#allocation7 + $0x8] sm:$0xff]  ;;  %v171_v9 = vld [vmem:[#allocation7 + $0x10] sm:$0xff]  ;;  %v504_v11 = vpack.c.bf16 %v84_v6, %v83_v4  ;;  %s365_s29 = sshll.u32 %s691_s28, 4  ;;  %s366_s29 = int_to_ptr.vmem [resolvable:$true] %s365_s29 }
  0x4c   :  { %v172_v10 = vld [vmem:[#allocation7 + $0x18] sm:$0xff]  ;;  %v507_v12 = vpack.c.bf16 %v170_v8, %v169_v7  ;;  %v173_v14 = vld [vmem:[#allocation7 + $0x20] sm:$0xff]  ;;  %v174_v15 = vld [vmem:[#allocation7 + $0x28] sm:$0xff]  ;;  %s652_s30 = scalar_lea.vmem %s366_s29, 128  ;;  %p657_p5 = scmp.lt.s32.totalorder %s366_s29, %s366_s29 }
  0x4d   :  { %502 = vmatpush3.bf16.msra.mxu0 %v501_v5  ;;  %v510_v13 = vpack.c.bf16 %v172_v10, %v171_v9  ;;  %v80_v16 = vld [vmem:[#allocation2] sm:$0xff]  ;;  %v513_v17 = vpack.c.bf16 %v174_v15, %v173_v14  ;;  %v175_v18 = vld [vmem:[#allocation7 + $0x30] sm:$0xff]  ;;  %v177_v21 = vld [vmem:[#allocation7 + $0x40] sm:$0xff]  ;;  %p653_p4 = scmp.ne.s32.totalorder %s366_s29, %s652_s30  ;;  %p658_p6 = scmp.lt.s32.totalorder %s652_s30, %s652_s30 }
  0x4e   :  { %503 = vmatprep.subr.bf16.mxu0 %v688_v0  ;;  %508 = vmatpush3.bf16.msra.mxu1 %v507_v12  ;;  %v176_v19 = vld [vmem:[#allocation7 + $0x38] sm:$0xff]  ;;  %v178_v22 = vld [vmem:[#allocation7 + $0x48] sm:$0xff]  ;;  %v179_v24 = vld [vmem:[#allocation7 + $0x50] sm:$0xff] }
  0x4f   :  { %509 = vmatprep.subr.bf16.mxu1 %v688_v0  ;;  %v516_v20 = vpack.c.bf16 %v176_v19, %v175_v18  ;;  %v519_v23 = vpack.c.bf16 %v178_v22, %v177_v21  ;;  %v180_v25 = vld [vmem:[#allocation7 + $0x58] sm:$0xff]  ;;  %v181_v27 = vld [vmem:[#allocation7 + $0x60] sm:$0xff]  ;;  %v182_v28 = vld [vmem:[#allocation7 + $0x68] sm:$0xff]  ;;  %p659_p7 = por %p658_p6, %p657_p5 }
  0x50   :  { %v522_v26 = vpack.c.bf16 %v180_v25, %v179_v24  ;;  %v525_v29 = vpack.c.bf16 %v182_v28, %v181_v27  ;;  %v183_v30 = vld [vmem:[#allocation7 + $0x70] sm:$0xff]  ;;  %v184_v31 = vld [vmem:[#allocation7 + $0x78] sm:$0xff]  ;;  %v265_v33 = vld [vmem:[#allocation8] sm:$0xff] }
  0x51   :  { %505 = vmatpush3.bf16.msra.mxu0 %v504_v11  ;;  %v528_v32 = vpack.c.bf16 %v184_v31, %v183_v30  ;;  %v266_v34 = vld [vmem:[#allocation8 + $0x8] sm:$0xff]  ;;  %v267_v35 = vld [vmem:[#allocation8 + $0x10] sm:$0xff]  ;;  %v268_v37 = vld [vmem:[#allocation8 + $0x18] sm:$0xff]  ;;  %p660_p8 = pnand %p659_p7, %p653_p4 }
  0x52   :  { %530 = vmatprep.subr.bf16.mxu0 %v688_v0  ;;  %511 = vmatpush3.bf16.msra.mxu1 %v510_v13  ;;  %v531_v36 = vpack.c.bf16 %v266_v34, %v265_v33  ;;  %v534_v38 = vpack.c.bf16 %v268_v37, %v267_v35  ;;  %v269_v39 = vld [vmem:[#allocation8 + $0x20] sm:$0xff]  ;;  %v270_v40 = vld [vmem:[#allocation8 + $0x28] sm:$0xff]  ;;  %v271_v42 = vld [vmem:[#allocation8 + $0x30] sm:$0xff] }
  0x53   :  { %512 = vmatprep.subr.bf16.mxu1 %v688_v0  ;;  %v537_v41 = vpack.c.bf16 %v270_v40, %v269_v39  ;;  %v272_v43 = vld [vmem:[#allocation8 + $0x38] sm:$0xff]  ;;  %v273_v45 = vld [vmem:[#allocation8 + $0x40] sm:$0xff]  ;;  %v274_v46 = vld [vmem:[#allocation8 + $0x48] sm:$0xff] }
  0x54   :  { %428 = vmatmul.mubr.msk.f32.vlgmr.msra.gmra.mrb[0].mxu0 %vm92_vm1, %v80_v16  ;;  %v540_v44 = vpack.c.bf16 %v272_v43, %v271_v42  ;;  %v543_v47 = vpack.c.bf16 %v274_v46, %v273_v45  ;;  %v275_v48 = vld [vmem:[#allocation8 + $0x50] sm:$0xff]  ;;  %v276_v49 = vld [vmem:[#allocation8 + $0x58] sm:$0xff]  ;;  %v277_v51 = vld [vmem:[#allocation8 + $0x60] sm:$0xff] }
  0x55   :  { %497 = vmatprep.mubr.msk.f32.mxu0 %vm689_vm0, %v690_v1  ;;  %532 = vmatpush3.bf16.msra.mxu0 %v531_v36  ;;  %v546_v50 = vpack.c.bf16 %v276_v49, %v275_v48  ;;  %v278_v52 = vld [vmem:[#allocation8 + $0x68] sm:$0xff]  ;;  %v376_v54 = vld [vmem:[%s833_s2] ss:$0 sm:$0xff]  ;;  %v279_v60 = vld [vmem:[#allocation8 + $0x70] sm:$0xff] }
  0x56   :  { %514 = vmatpush3.bf16.msra.mxu1 %v513_v17  ;;  %533 = vmatprep.subr.bf16.mxu0 %v688_v0  ;;  %v549_v53 = vpack.c.bf16 %v278_v52, %v277_v51  ;;  %v280_v61 = vld [vmem:[#allocation8 + $0x78] sm:$0xff] }
  0x57   :  { %515 = vmatprep.subr.bf16.mxu1 %v688_v0  ;;  %v552_v62 = vpack.c.bf16 %v280_v61, %v279_v60  ;;  %v378_v63 = vld [vmem:[%s835_s4] ss:$0 sm:$0xff] }
  0x58   :  { %v379_v5 = vld [vmem:[%s837_s6] ss:$0 sm:$0xff] }
  0x59   :  { %535 = vmatpush3.bf16.msra.mxu0 %v534_v38 }
  0x5a   :  { %517 = vmatpush3.bf16.msra.mxu1 %v516_v20  ;;  %536 = vmatprep.subr.bf16.mxu0 %v688_v0 }
  0x5b   :  { %518 = vmatprep.subr.bf16.mxu1 %v688_v0 }
  0x5d   :  { %538 = vmatpush3.bf16.msra.mxu0 %v537_v41 }
  0x5e   :  { %520 = vmatpush3.bf16.msra.mxu1 %v519_v23  ;;  %539 = vmatprep.subr.bf16.mxu0 %v688_v0 }
  0x5f   :  { %521 = vmatprep.subr.bf16.mxu1 %v688_v0 }
  0x61   :  { %541 = vmatpush3.bf16.msra.mxu0 %v540_v44 }
  0x62   :  { %523 = vmatpush3.bf16.msra.mxu1 %v522_v26  ;;  %542 = vmatprep.subr.bf16.mxu0 %v688_v0 }
  0x63   :  { %524 = vmatprep.subr.bf16.mxu1 %v688_v0 }
  0x65   :  { %544 = vmatpush3.bf16.msra.mxu0 %v543_v47 }
  0x66   :  { %526 = vmatpush3.bf16.msra.mxu1 %v525_v29  ;;  %545 = vmatprep.subr.bf16.mxu0 %v688_v0 }
  0x67   :  { %527 = vmatprep.subr.bf16.mxu1 %v688_v0 }
  0x69   :  { %547 = vmatpush3.bf16.msra.mxu0 %v546_v50 }
  0x6a   :  { %529 = vmatpush3.bf16.msra.mxu1 %v528_v32  ;;  %548 = vmatprep.subr.bf16.mxu0 %v688_v0 }
  0x6d   :  { %550 = vmatpush3.bf16.msra.mxu0 %v549_v53 }
  0x6e   :  { %551 = vmatprep.subr.bf16.mxu0 %v688_v0 }
  0x71   :  { %553 = vmatpush3.bf16.msra.mxu0 %v552_v62 }
 0x127   :  { %v162_v55 = vpop.f32.mrb[0].mxu0 }
 0x128   :  { %v163_v56 = vadd.f32 %v376_v54, %v162_v55  ;;  %v429_v57 = vpop.f32.mrb[1].mxu0 }
 0x12a   :  { %v167_v58 = vmul.f32 0.2, %v163_v56  ;;  %vm166_vm2 = vcmp.ge.f32.partialorder %v163_v56, 0.0 }
 0x12c   :  { %v168_v59 = vsel %vm166_vm2, %v163_v56, %v167_v58 }
 0x12d   :  { %463 = vmatmul.mubr.f32.vlgmr.msra.gmra.mrb[0].mxu1 %v168_v59 }
 0x200   :  { %v258_v0 = vpop.f32.mrb[0].mxu1 }
 0x201   :  { %v259_v1 = vadd.f32 %v378_v63, %v258_v0  ;;  %v464_v2 = vpop.f32.mrb[1].mxu1 }
 0x203   :  { %vm262_vm3 = vcmp.ge.f32.partialorder %v259_v1, 0.0  ;;  %v263_v3 = vmul.f32 0.2, %v259_v1 }
 0x205   :  { %v264_v4 = vsel %vm262_vm3, %v259_v1, %v263_v3 }
 0x206   :  { %498 = vmatmul.mubr.f32.vlgmr.msra.gmra.mrb[2].mxu0 %v264_v4 }
 0x2d9   :  { %v354_v6 = vpop.f32.mrb[2].mxu0 }
 0x2da   :  { %v355_v7 = vadd.f32 %v379_v5, %v354_v6  ;;  %v499_v8 = vpop.f32.mrb[3].mxu0 }
 0x2dc   :  { %358 = vst [vmem:[#allocation10] sm:$0xff] %v355_v7 }
 0x2dd   :  { %663 = shalt.err (!%p660_p8)
}
 0x2de   :  { %s664_s9 = scalar_lea.hbm %s838_s7, 128 }
 0x2df   :  { %p665_p9 = scmp.ne.s32.totalorder %s838_s7, %s664_s9  ;;  %p668_p10 = scmp.lt.u32.totalorder %s664_s9, %s838_s7 }
 0x2e1   :  { %p670_p11 = pnand %p668_p10, %p665_p9 }
 0x2e3   :  { %673 = shalt.err (!%p670_p11)
}
 0x2e4   :  { %368 = dma.vmem_to_hbm [thread:$0]  %s366_s29, 128, %s838_s7, [#allocation4]  }
 0x2e5   :  { %680 = dma.done.wait [#allocation4], 128  }
 0x2e6   :  { %681 = vsyncadd [#allocation4], 4294967168 }
 0x2e7   :  { %372 = vsyncpa [#allocation3], 1 }
 0x2e8   :  { %373 = vsyncpa [#allocation6], 1 }
 0x2e9   :  { %374 = vsyncpa [#allocation9], 1 }
 0x2ea   :  { %375 = vsyncpa [#allocation4], 1 }

</bundles_post_ra>
